<compile_context>
chip_gen: v6e
topology: v6e:2x2x1
jax: 0.10.0
libtpu: 0.0.40
codegen_flags: <defaults>
</compile_context>

<pallas_src>
import functools
import math

import jax
import jax.numpy as jnp
from jax.experimental import pallas as pl
from jax.experimental.pallas import tpu as pltpu

_EPS = 1e-6


# ---------------------------------------------------------------------------
# Hardware-aware sizing helpers
# ---------------------------------------------------------------------------
@functools.lru_cache(maxsize=1)
def _tpu_vmem_bytes():
    try:
        info = pltpu.get_tpu_info()
        return int(getattr(info, "vmem_capacity_bytes", 64 * 1024 * 1024))
    except Exception:
        return 64 * 1024 * 1024  # conservative: v7x per-TensorCore VMEM


def _round_up(x, m):
    return (x + m - 1) // m * m


def _pick_tile_rows(rows, d, itemsize):
    """Row tile: ~2 MiB blocks on v7x, ~4 MiB on v5e/v6e, multiple of 8 sublanes,
    capped so the grid has >= ~4 steps whenever the row count allows it."""
    vmem = _tpu_vmem_bytes()
    target_bytes = (4 << 20) if vmem >= (96 << 20) else (2 << 20)
    t = max(8, target_bytes // max(1, d * itemsize))
    if rows >= 32:
        # >= 4 grid steps: both v7x TensorCores busy + DMA double-buffering.
        t = min(t, rows // 4)
    t = max(8, (t // 8) * 8)
    t = min(t, _round_up(rows, 8))
    return t


def _vmem_limit(n_streams, block_bytes_f32):
    """n_streams operands/outputs x 2 pipeline buffers + f32 LN temporaries + slack."""
    vmem = _tpu_vmem_bytes()
    need = 2 * n_streams * block_bytes_f32 + 2 * block_bytes_f32 + (2 << 20)
    cap = (100 << 20) if vmem >= (96 << 20) else (48 << 20)
    return int(min(max(need, 16 << 20), cap))


def _row_spec(tile, d):
    return pl.BlockSpec((tile, d), lambda r: (r, 0))


def _flatten(x):
    shape = x.shape
    d = shape[-1]
    rows = math.prod(shape[:-1])
    return x.reshape(rows, d), shape, rows, d


def _pad_rows(x2, rows, tile):
    padded = _round_up(rows, tile)
    if padded != rows:
        x2 = jnp.pad(x2, ((0, padded - rows), (0, 0)))
    return x2, padded


# ---------------------------------------------------------------------------
# Kernel bodies
# ---------------------------------------------------------------------------
def _layernorm_rows(xf, alpha, bias, eps):
    """alpha * (x - mean) / (unbiased_std + eps) + bias on f32 rows.

    The divide is done once per row (TILE_R, 1) with alpha folded in, then
    applied as a broadcast multiply — D x fewer reciprocals than a full-tile
    divide, within ~1-2 ulp of the exact formula."""
    d = xf.shape[-1]
    mean = jnp.sum(xf, axis=-1, keepdims=True) * jnp.float32(1.0 / d)
    diff = xf - mean
    # torch.std default is the unbiased estimator (ddof = 1).
    var = jnp.sum(diff * diff, axis=-1, keepdims=True) * jnp.float32(1.0 / (d - 1))
    std = jnp.sqrt(var)
    scale = alpha / (std + jnp.float32(eps))          # (TILE_R, 1) column
    return diff * scale + bias


def _ln_kernel(alpha_ref, bias_ref, x_ref, o_ref, *, eps):
    # x_ref: (TILE_R, D) VMEM tile; alpha/bias: (1,) scalars in SMEM.
    y = _layernorm_rows(x_ref[...].astype(jnp.float32),
                        alpha_ref[0], bias_ref[0], eps)
    o_ref[...] = y.astype(o_ref.dtype)


def _add_ln_kernel(alpha_ref, bias_ref, x_ref, y_ref, sum_ref, norm_ref, *, eps):
    # Fused: s = x + y (residual), n = LayerNorm(s) (pre-norm of next residual).
    s = x_ref[...].astype(jnp.float32) + y_ref[...].astype(jnp.float32)
    sum_ref[...] = s.astype(sum_ref.dtype)
    n = _layernorm_rows(s, alpha_ref[0], bias_ref[0], eps)
    norm_ref[...] = n.astype(norm_ref.dtype)


# ---------------------------------------------------------------------------
# Pallas wrappers
# ---------------------------------------------------------------------------
def pallas_layernorm(x, alpha, bias, eps=_EPS):
    """Scalar-affine LayerNorm over the last dim of x ([..., D])."""
    x2, shape, rows, d = _flatten(x)
    tile = _pick_tile_rows(rows, d, x2.dtype.itemsize)
    x2p, padded = _pad_rows(x2, rows, tile)
    block_f32 = tile * d * 4
    out = pl.pallas_call(
        functools.partial(_ln_kernel, eps=eps),
        out_shape=jax.ShapeDtypeStruct((padded, d), x.dtype),
        grid_spec=pltpu.PrefetchScalarGridSpec(
            num_scalar_prefetch=0,
            grid=(padded // tile,),
            in_specs=[
                pl.BlockSpec(memory_space=pltpu.MemorySpace.SMEM),  # alpha (1,)
                pl.BlockSpec(memory_space=pltpu.MemorySpace.SMEM),  # bias  (1,)
                _row_spec(tile, d),
            ],
            out_specs=_row_spec(tile, d),
        ),
        compiler_params=pltpu.CompilerParams(
            dimension_semantics=("parallel",),
            vmem_limit_bytes=_vmem_limit(2, block_f32),
        ),
    )(alpha, bias, x2p)
    if padded != rows:
        out = out[:rows]
    return out.reshape(shape)


def pallas_add_layernorm(x, y, alpha, bias, eps=_EPS):
    """Returns (x + y, LayerNorm(x + y)) in one fused pass over HBM."""
    x2, shape, rows, d = _flatten(x)
    y2 = y.reshape(rows, d)
    tile = _pick_tile_rows(rows, d, x2.dtype.itemsize)
    x2p, padded = _pad_rows(x2, rows, tile)
    y2p, _ = _pad_rows(y2, rows, tile)
    block_f32 = tile * d * 4
    s, n = pl.pallas_call(
        functools.partial(_add_ln_kernel, eps=eps),
        out_shape=(
            jax.ShapeDtypeStruct((padded, d), x.dtype),
            jax.ShapeDtypeStruct((padded, d), x.dtype),
        ),
        grid_spec=pltpu.PrefetchScalarGridSpec(
            num_scalar_prefetch=0,
            grid=(padded // tile,),
            in_specs=[
                pl.BlockSpec(memory_space=pltpu.MemorySpace.SMEM),  # alpha (1,)
                pl.BlockSpec(memory_space=pltpu.MemorySpace.SMEM),  # bias  (1,)
                _row_spec(tile, d),
                _row_spec(tile, d),
            ],
            out_specs=[_row_spec(tile, d), _row_spec(tile, d)],
        ),
        compiler_params=pltpu.CompilerParams(
            dimension_semantics=("parallel",),
            vmem_limit_bytes=_vmem_limit(4, block_f32),
        ),
    )(alpha, bias, x2p, y2p)
    if padded != rows:
        s, n = s[:rows], n[:rows]
    return s.reshape(shape), n.reshape(shape)


# ---------------------------------------------------------------------------
# DecoderBlock forward (mirrors the PyTorch module)
# ---------------------------------------------------------------------------
def decoder_block_forward(x, enc_output, src_mask, tgt_mask,
                          self_attention, cross_attention, feed_forward,
                          ln_params, eps=_EPS, n0=None, next_ln_params=None):
    """Mirror of DecoderBlock.forward.

    ln_params = [(alpha_i, bias_i)] for the three ResidualConnection norms
    (shape (1,) scalars, as in the source module).
    n0: optional precomputed LayerNorm_0(x) coming from a fused previous-block
        seam (so the entry norm is not recomputed).
    next_ln_params: when stacking blocks, the NEXT block's first-norm params;
        the final residual add is then fused with that pre-norm and the
        function returns (x_out, norm_for_next_block).
    """
    (a0, b0), (a1, b1), (a2, b2) = ln_params
    # TODO(synk): nn.Dropout on the sublayer outputs is eval-mode identity here
    # (training-mode dropout not implemented in the Pallas kernels).
    if n0 is None:
        n0 = pallas_layernorm(x, a0, b0, eps)
    # Residual 0: x1 = x + self_attn(LN_0(x)); fused with LN_1 pre-norm.
    sa = self_attention(n0, n0, n0, tgt_mask)
    x1, n1 = pallas_add_layernorm(x, sa, a1, b1, eps)
    # Residual 1: x2 = x1 + cross_attn(LN_1(x1)); fused with LN_2 pre-norm.
    ca = cross_attention(n1, enc_output, enc_output, src_mask)
    x2, n2 = pallas_add_layernorm(x1, ca, a2, b2, eps)
    # Residual 2: x3 = x2 + feed_forward(LN_2(x2)).
    ff = feed_forward(n2)
    if next_ln_params is not None:
        # Block seam: fuse the residual add with the next block's first pre-norm.
        na, nb = next_ln_params
        x3, n_next = pallas_add_layernorm(x2, ff, na, nb, eps)
        return x3, n_next
    # Last block: plain JAX add so XLA fuses it into the FFN matmul epilogue
    # (no extra HBM round trip for the FFN output).
    return x2 + ff


def decoder_stack_forward(x, enc_output, src_mask, tgt_mask, blocks, eps=_EPS):
    """Stack of DecoderBlocks with the residual-add / pre-norm seams fused."""
    n0 = None
    for i, blk in enumerate(blocks):
        next_ln = blocks[i + 1]["ln_params"][0] if i + 1 < len(blocks) else None
        out = decoder_block_forward(
            x, enc_output, src_mask, tgt_mask,
            blk["self_attn"], blk["cross_attn"], blk["ff"],
            blk["ln_params"], eps=eps, n0=n0, next_ln_params=next_ln)
        if next_ln is not None:
            x, n0 = out
        else:
            x, n0 = out, None
    return x


# ---------------------------------------------------------------------------
# External sublayer stand-ins (injected modules in the PyTorch code) + demo
# ---------------------------------------------------------------------------
def make_attention():
    # TODO(synk): the attention sublayers are external modules injected into
    # DecoderBlock.__init__; a scaled-dot-product stand-in in plain JAX is used
    # here rather than a Pallas kernel.
    def attn(q, k, v, mask):
        d = q.shape[-1]
        scores = jnp.einsum("bqd,bkd->bqk", q, k) / jnp.sqrt(jnp.float32(d))
        scores = jnp.where(mask == 0, jnp.float32(-1e9), scores)
        w = jax.nn.softmax(scores, axis=-1)
        return jnp.einsum("bqk,bkd->bqd", w, v).astype(q.dtype)
    return attn


def make_feed_forward(key, d_model, d_ff):
    # TODO(synk): feed_forward is an external injected module; plain-JAX MLP stand-in.
    k1, k2 = jax.random.split(key)
    w1 = jax.random.normal(k1, (d_model, d_ff), jnp.float32) * 0.05
    w2 = jax.random.normal(k2, (d_ff, d_model), jnp.float32) * 0.05
    def ff(h):
        return jnp.maximum(h @ w1, 0.0) @ w2
    return ff


def _ref_layernorm(x, alpha, bias, eps):
    mean = jnp.mean(x, axis=-1, keepdims=True)
    var = jnp.sum((x - mean) ** 2, axis=-1, keepdims=True) / (x.shape[-1] - 1)
    std = jnp.sqrt(var)
    return alpha * (x - mean) / (std + eps) + bias


if __name__ == "__main__":
    key = jax.random.PRNGKey(0)
    B, S, S_ENC, D, D_FF = 2, 8, 8, 128, 256
    N_BLOCKS = 2
    keys = jax.random.split(key, 2 + N_BLOCKS)
    x = jax.random.normal(keys[0], (B, S, D), dtype=jnp.float32)
    enc_output = jax.random.normal(keys[1], (B, S_ENC, D), dtype=jnp.float32)
    tgt_mask = jnp.tril(jnp.ones((1, S, S), dtype=jnp.float32))      # causal
    src_mask = jnp.ones((1, S, S_ENC), dtype=jnp.float32)

    blocks = []
    for i in range(N_BLOCKS):
        ln_params = [
            (jnp.full((1,), 1.0 + 0.05 * (3 * i + j), jnp.float32),
             jnp.full((1,), 0.01 * (3 * i + j), jnp.float32))
            for j in range(3)
        ]
        blocks.append(dict(
            self_attn=make_attention(),
            cross_attn=make_attention(),
            ff=make_feed_forward(keys[2 + i], D, D_FF),
            ln_params=ln_params,
        ))

    out = decoder_stack_forward(x, enc_output, src_mask, tgt_mask, blocks, eps=_EPS)
    out = jax.block_until_ready(out)

    # Plain-JAX reference of the same stacked forward pass.
    ref = x
    for blk in blocks:
        (a0, b0), (a1, b1), (a2, b2) = blk["ln_params"]
        n0 = _ref_layernorm(ref, a0, b0, _EPS)
        x1 = ref + blk["self_attn"](n0, n0, n0, tgt_mask)
        n1 = _ref_layernorm(x1, a1, b1, _EPS)
        x2 = x1 + blk["cross_attn"](n1, enc_output, enc_output, src_mask)
        n2 = _ref_layernorm(x2, a2, b2, _EPS)
        ref = x2 + blk["ff"](n2)

    err = float(jnp.max(jnp.abs(out - ref)))
    assert jnp.allclose(out, ref, atol=1e-4, rtol=1e-4), err

    print("KERNEL_OK")
</pallas_src>

<mosaic_0001>
module attributes {stable_mosaic.version = 11 : i64} {
  func.func @_ln_kernel(%arg0: i32, %arg1: memref<1xf32, #tpu.memory_space<smem>>, %arg2: memref<1xf32, #tpu.memory_space<smem>>, %arg3: memref<16x128xf32, #tpu.memory_space<vmem>>, %arg4: memref<16x128xf32, #tpu.memory_space<vmem>>) attributes {dimension_semantics = [#tpu.dimension_semantics<parallel>], iteration_bounds = array<i64: 1>, scalar_prefetch = 0 : i64, scratch_operands = 0 : i64, tpu.core_type = #tpu.core_type<tc>, window_params = [{transform_indices = @transform_0, window_bounds = array<i64: 1>}, {transform_indices = @transform_1, window_bounds = array<i64: 1>}, {transform_indices = @transform_2, window_bounds = array<i64: 16, 128>}, {transform_indices = @transform_3, window_bounds = array<i64: 16, 128>}]} {
    %c0 = arith.constant 0 : index
    %c0_0 = arith.constant 0 : index
    %0 = vector.load %arg3[%c0, %c0_0] : memref<16x128xf32, #tpu.memory_space<vmem>>, vector<16x128xf32>
    %c0_1 = arith.constant 0 : index
    %1 = memref.load %arg1[%c0_1] : memref<1xf32, #tpu.memory_space<smem>>
    %c0_2 = arith.constant 0 : index
    %2 = memref.load %arg2[%c0_2] : memref<1xf32, #tpu.memory_space<smem>>
    %cst = arith.constant dense<0.000000e+00> : vector<16xf32>
    %3 = vector.multi_reduction <add>, %0, %cst [1] : vector<16x128xf32> to vector<16xf32>
    %4 = vector.shape_cast %3 : vector<16xf32> to vector<16x1xf32>
    %cst_3 = arith.constant 7.812500e-03 : f32
    %5 = vector.broadcast %cst_3 : f32 to vector<16x1xf32>
    %6 = arith.mulf %4, %5 : vector<16x1xf32>
    %7 = vector.broadcast %6 : vector<16x1xf32> to vector<16x128xf32>
    %8 = arith.subf %0, %7 : vector<16x128xf32>
    %9 = arith.mulf %8, %8 : vector<16x128xf32>
    %cst_4 = arith.constant dense<0.000000e+00> : vector<16xf32>
    %10 = vector.multi_reduction <add>, %9, %cst_4 [1] : vector<16x128xf32> to vector<16xf32>
    %11 = vector.shape_cast %10 : vector<16xf32> to vector<16x1xf32>
    %cst_5 = arith.constant 0.00787401571 : f32
    %12 = vector.broadcast %cst_5 : f32 to vector<16x1xf32>
    %13 = arith.mulf %11, %12 : vector<16x1xf32>
    %14 = math.sqrt %13 : vector<16x1xf32>
    %cst_6 = arith.constant 9.99999997E-7 : f32
    %15 = vector.broadcast %cst_6 : f32 to vector<16x1xf32>
    %16 = arith.addf %14, %15 : vector<16x1xf32>
    %17 = vector.broadcast %1 : f32 to vector<16x1xf32>
    %18 = arith.divf %17, %16 : vector<16x1xf32>
    %19 = vector.broadcast %18 : vector<16x1xf32> to vector<16x128xf32>
    %20 = arith.mulf %8, %19 : vector<16x128xf32>
    %21 = vector.broadcast %2 : f32 to vector<16x128xf32>
    %22 = arith.addf %20, %21 : vector<16x128xf32>
    %c0_7 = arith.constant 0 : index
    %c0_8 = arith.constant 0 : index
    %23 = vector.load %arg4[%c0_7, %c0_8] : memref<16x128xf32, #tpu.memory_space<vmem>>, vector<16x128xf32>
    tpu.vector_store %arg4[%c0_7, %c0_8], %22 {strides = array<i32>} : memref<16x128xf32, #tpu.memory_space<vmem>>, vector<16x128xf32>,
    return
  }
  func.func @transform_0(%arg0: i32) -> i32 {
    %c0_i32 = arith.constant 0 : i32
    %c0_i32_0 = arith.constant 0 : i32
    return %c0_i32 : i32
  }
  func.func @transform_1(%arg0: i32) -> i32 {
    %c0_i32 = arith.constant 0 : i32
    %c0_i32_0 = arith.constant 0 : i32
    return %c0_i32 : i32
  }
  func.func @transform_2(%arg0: i32) -> (i32, i32) {
    %c0_i32 = arith.constant 0 : i32
    %c0_i32_0 = arith.constant 0 : i32
    return %arg0, %c0_i32 : i32, i32
  }
  func.func @transform_3(%arg0: i32) -> (i32, i32) {
    %c0_i32 = arith.constant 0 : i32
    %c0_i32_0 = arith.constant 0 : i32
    return %arg0, %c0_i32 : i32, i32
  }
}

</mosaic_0001>

<bundles_post_ra>
// kernel: tpu_custom_call.1
= control target key start
LH: loop header
LB: loop body
LE: loop exit
PB: predicated region body
PF: predicated region fallthrough
CT: control target
= control target key end

     0   :  { %10 = vsyncpa [#allocation5], 0  ;;  %s194_s0 = inlined_call_operand.<no memory space> [shape: f32[1], index: 0, kind: input, shape index: {}]   ;;  %s195_s1 = inlined_call_operand.<no memory space> [shape: f32[1], index: 1, kind: input, shape index: {}]   ;;  %s196_s2 = inlined_call_operand.hbm [shape: f32[16,128], index: 2, kind: input, shape index: {}]   ;;  %s197_s3 = inlined_call_operand.hbm [shape: f32[16,128], index: 3, kind: output, shape index: {}]  }
   0x1   :  { %11 = vsyncpa [#allocation6], 0  ;;  %s152_s12 = smov [#allocation4]  }
   0x2   :  { %s21_s13 = sshll.u32 %s152_s12, 4  ;;  %s22_s13 = int_to_ptr.vmem [resolvable:$true] %s21_s13 }
   0x3   :  { %s116_s14 = scalar_lea.vmem %s22_s13, 256  ;;  %p121_p1 = scmp.lt.s32.totalorder %s22_s13, %s22_s13 }
   0x4   :  { %p117_p0 = scmp.ne.s32.totalorder %s22_s13, %s116_s14  ;;  %p122_p2 = scmp.lt.s32.totalorder %s116_s14, %s116_s14 }
   0x6   :  { %p123_p3 = por %p122_p2, %p121_p1 }
   0x8   :  { %p124_p4 = pnand %p123_p3, %p117_p0 }
   0xa   :  { %127 = shalt.err (!%p124_p4)
}
   0xb   :  { %s153_s15 = smov 128   ;;  %s154_s16 = smov 8  }
   0xc   :  { %27 = dma.hbm_to_vmem [thread:$0]  %s196_s2, 256, %s22_s13, [#allocation5], %s153_s15, %s153_s15, %s154_s16  }
   0xd   :  { %148 = dma.done.wait [#allocation5], 256  }
   0xe   :  { %149 = vsyncadd [#allocation5], 4294967040  ;;  %v31_v0 = vld [vmem:[#allocation4] sm:$0xff]  ;;  %v32_v1 = vld [vmem:[#allocation4 + $0x8] sm:$0xff]  ;;  %v67_v26 = vstv %s194_s0  ;;  %v74_v29 = vstv %s195_s1  ;;  %s155_s22 = smov [#allocation7]  }
   0xf   :  { %35 = vadd.xlane.f32.xlu0 %v31_v0  ;;  %s84_s23 = sshll.u32 %s155_s22, 4  ;;  %s85_s23 = int_to_ptr.vmem [resolvable:$true] %s84_s23 }
  0x10   :  { %s128_s24 = scalar_lea.vmem %s85_s23, 256  ;;  %p133_p6 = scmp.lt.s32.totalorder %s85_s23, %s85_s23 }
  0x11   :  { %p129_p5 = scmp.ne.s32.totalorder %s85_s23, %s128_s24  ;;  %p134_p7 = scmp.lt.s32.totalorder %s128_s24, %s128_s24 }
  0x13   :  { %37 = vadd.xlane.f32.xlu0 %v32_v1  ;;  %p135_p8 = por %p134_p7, %p133_p6 }
  0x15   :  { %p136_p9 = pnand %p135_p8, %p129_p5 }
  0x98   :  { %v36_v2 = vpop.xlane.xlu0 %35 }
  0x99   :  { %v39_v3 = vmul.f32 0.0078125, %v36_v2 }
  0x9b   :  { %v41_v4 = vsub.f32 %v31_v0, %v39_v3 }
  0x9c   :  { %v38_v5 = vpop.xlane.xlu0 %37 }
  0x9d   :  { %v40_v6 = vmul.f32 0.0078125, %v38_v5  ;;  %v43_v7 = vmul.f32 %v41_v4, %v41_v4 }
  0x9f   :  { %v42_v8 = vsub.f32 %v32_v1, %v40_v6  ;;  %45 = vadd.xlane.f32.xlu1 %v43_v7 }
  0xa1   :  { %v44_v9 = vmul.f32 %v42_v8, %v42_v8 }
  0xa3   :  { %47 = vadd.xlane.f32.xlu1 %v44_v9 }
 0x128   :  { %v46_v10 = vpop.xlane.xlu1 %45 }
 0x129   :  { %v49_v11 = vmul.f32 0.007874016, %v46_v10 }
 0x12b   :  { %100 = vrsqrt.f32 %v49_v11  ;;  %vm53_vm0 = vcmp.eq.f32.partialorder %v49_v11, inf  ;;  %v56_v16 = vand.u32 2147483648, %v49_v11  ;;  %vm55_vm1 = vcmp.eq.f32.partialorder %v49_v11, 0.0 }
 0x12c   :  { %v48_v12 = vpop.xlane.xlu1 %47 }
 0x12d   :  { %v50_v13 = vmul.f32 0.007874016, %v48_v12 }
 0x12f   :  { %102 = vrsqrt.f32 %v50_v13  ;;  %vm60_vm2 = vcmp.eq.f32.partialorder %v50_v13, inf  ;;  %v63_v22 = vand.u32 2147483648, %v50_v13  ;;  %vm62_vm3 = vcmp.eq.f32.partialorder %v50_v13, 0.0 }
 0x138   :  { %v101_v14 = vpop.eup %100 }
 0x139   :  { %v52_v15 = vmul.f32 %v101_v14, %v49_v11 }
 0x13b   :  { %v54_v17 = vsel %vm53_vm0, %v49_v11, %v52_v15 }
 0x13c   :  { %v103_v18 = vpop.eup %102  ;;  %v57_v19 = vsel %vm55_vm1, %v56_v16, %v54_v17 }
 0x13d   :  { %v65_v20 = vadd.f32 1e-06, %v57_v19  ;;  %v59_v21 = vmul.f32 %v103_v18, %v50_v13 }
 0x13f   :  { %104 = vrcp.f32 %v65_v20  ;;  %v61_v23 = vsel %vm60_vm2, %v50_v13, %v59_v21 }
 0x140   :  { %v64_v24 = vsel %vm62_vm3, %v63_v22, %v61_v23 }
 0x141   :  { %v66_v25 = vadd.f32 1e-06, %v64_v24 }
 0x143   :  { %106 = vrcp.f32 %v66_v25 }
 0x14c   :  { %v105_v27 = vpop.eup %104 }
 0x14d   :  { %v69_v28 = vmul.f32 %v105_v27, %v67_v26 }
 0x14f   :  { %v72_v30 = vmul.f32 %v69_v28, %v41_v4 }
 0x150   :  { %v107_v31 = vpop.eup %106 }
 0x151   :  { %v71_v32 = vmul.f32 %v107_v31, %v67_v26  ;;  %v75_v33 = vadd.f32 %v74_v29, %v72_v30 }
 0x153   :  { %v73_v34 = vmul.f32 %v71_v32, %v42_v8  ;;  %77 = vst [vmem:[#allocation7] sm:$0xff] %v75_v33 }
 0x155   :  { %v76_v35 = vadd.f32 %v74_v29, %v73_v34 }
 0x157   :  { %78 = vst [vmem:[#allocation7 + $0x8] sm:$0xff] %v76_v35 }
 0x158   :  { %139 = shalt.err (!%p136_p9)
}
 0x159   :  { %90 = dma.vmem_to_hbm [thread:$0]  %s85_s23, 256, %s197_s3, [#allocation6], %s153_s15, %s153_s15, %s154_s16  }
 0x15a   :  { %150 = dma.done.wait [#allocation6], 256  }
 0x15b   :  { %151 = vsyncadd [#allocation6], 4294967040 }
 0x15c   :  { %94 = vsyncpa [#allocation5], 1 }
 0x15d   :  { %95 = vsyncpa [#allocation6], 1 }

</bundles_post_ra>
